<compile_context>
chip_gen: v7x
topology: tpu7x:2x2x1
jax: 0.10.0
libtpu: 0.0.40
codegen_flags: <defaults>
</compile_context>

<pallas_src>
import math

import jax
import jax.numpy as jnp
from jax.experimental import pallas as pl
from jax.experimental.pallas import tpu as pltpu


def _merge_proj_kernel(x_ref, w_ref, o_ref):
    # x_ref: (4C, TM) channel-major tile of merged 2x2 patches (bf16/f32)
    # w_ref: (2C, 4C) projection weight, resident in VMEM (constant index map)
    # o_ref: (2C, TM) channel-major output tile (f32), lane-dense on TM
    o_ref[...] = jnp.dot(
        w_ref[...], x_ref[...], preferred_element_type=jnp.float32
    ).astype(o_ref.dtype)


def _pick_tile(m: int, target: int = 512) -> int:
    """Largest multiple-of-128 divisor of m that is <= target.

    Falls back to the full extent (a full-extent block is always legal), so no
    padding copy of the operand is ever made."""
    if m <= 128 or m % 128 != 0:
        return m
    cand = min(target, m)
    cand -= cand % 128
    while cand >= 128:
        if m % cand == 0:
            return cand
        cand -= 128
    return m


def patch_merging_forward(x, proj_weight, *, tile_m=512, operand_dtype=jnp.bfloat16):
    """PatchMerging forward.

    x:           (B, C, H, W) float32 (torch NCHW input)
    proj_weight: (2C, 4C)     float32 (torch nn.Linear(4C, 2C, bias=False).weight)
    returns      (B, 2C, H//2, W//2) float32
    """
    B, C, H, W = x.shape
    if H % 2 != W % 2:
        # The torch module's swapped F.pad arguments only yield a runnable,
        # well-defined result when H % 2 == W % 2.
        raise ValueError("PatchMerging requires H % 2 == W % 2.")
    if H % 2 == 1:  # both odd: pad one row and one column (matches torch here)
        x = jnp.pad(x, ((0, 0), (0, 0), (0, 1), (0, 1)))
        H, W = H + 1, W + 1
    OH, OW = H // 2, W // 2
    M = OH * OW
    K, N = 4 * C, 2 * C

    # --- 2x2 parity gather, channel-major, in the torch concat order
    #     [(h even, w even), (h even, w odd), (h odd, w even), (h odd, w odd)].
    # Pure strided slicing + concat (no channel transpose, 1x data traffic);
    # allow_input_fusion below lets XLA fuse it into the kernel's input DMA.
    x_cm = jnp.concatenate(
        [x[:, :, 0::2, 0::2], x[:, :, 0::2, 1::2],
         x[:, :, 1::2, 0::2], x[:, :, 1::2, 1::2]],
        axis=1,
    ).reshape(B, K, M).astype(operand_dtype)
    w_cm = proj_weight.astype(operand_dtype)                     # (2C, 4C)

    tm = _pick_tile(M, tile_m)
    n_m = M // tm
    if B * n_m < 2 and tm % 256 == 0:        # keep both v7x TensorCores busy
        tm //= 2
        n_m = M // tm

    # Explicit VMEM budget: double-buffered x/out tiles + (double-buffered)
    # resident weight, with 2x headroom.
    op_b = jnp.dtype(operand_dtype).itemsize
    need = 2 * K * tm * op_b + 2 * N * K * op_b + 2 * N * tm * 4
    vmem_limit = int(min(max(2 * need, 32 * 1024 * 1024), 100 * 1024 * 1024))

    cost = pl.CostEstimate(
        flops=2 * B * M * K * N,
        transcendentals=0,
        bytes_accessed=B * K * M * op_b + K * N * op_b + B * N * M * 4,
    )

    out = pl.pallas_call(
        _merge_proj_kernel,
        out_shape=jax.ShapeDtypeStruct((B, N, M), jnp.float32),
        grid=(B, n_m),
        in_specs=[
            pl.BlockSpec((None, K, tm), lambda b, j: (b, 0, j)),   # x tiles stream
            pl.BlockSpec((N, K), lambda b, j: (0, 0)),             # weight resident
        ],
        out_specs=pl.BlockSpec((None, N, tm), lambda b, j: (b, 0, j)),
        compiler_params=pltpu.CompilerParams(
            dimension_semantics=("parallel", "parallel"),
            vmem_limit_bytes=vmem_limit,
            allow_input_fusion=[True, False],   # fuse the gather, not the weight
        ),
        cost_estimate=cost,
    )(x_cm, w_cm)

    # (B, 2C, OH*OW) -> (B, 2C, OH, OW): free reshape, no transpose.
    return out.reshape(B, N, OH, OW)


def patch_merging_reference(x, proj_weight):
    """Pure-JAX transcription of the torch forward (f32)."""
    B, C, H, W = x.shape
    t = jnp.transpose(x, (0, 3, 2, 1))                        # (B, W, H, C)
    if H % 2 == 1 or W % 2 == 1:
        t = jnp.pad(t, ((0, 0), (0, H % 2), (0, W % 2), (0, 0)))
    x0 = t[:, 0::2, 0::2, :]
    x1 = t[:, 1::2, 0::2, :]
    x2 = t[:, 0::2, 1::2, :]
    x3 = t[:, 1::2, 1::2, :]
    xc = jnp.concatenate([x0, x1, x2, x3], axis=-1)           # (B, W/2, H/2, 4C)
    y = xc @ proj_weight.T                                     # (B, W/2, H/2, 2C)
    return jnp.transpose(y, (0, 3, 2, 1))                      # (B, 2C, H/2, W/2)


if __name__ == "__main__":
    # PatchMerging(dim=64), input (B, C, H, W) = (2, 64, 32, 32)
    B, dim, H, W = 2, 64, 32, 32

    key = jax.random.PRNGKey(0)
    kx, kw = jax.random.split(key)
    x = jax.random.normal(kx, (B, dim, H, W), dtype=jnp.float32)
    # nn.Linear(4*dim, 2*dim, bias=False) default init: U(-1/sqrt(4*dim), +).
    bound = 1.0 / math.sqrt(4 * dim)
    proj_w = jax.random.uniform(
        kw, (2 * dim, 4 * dim), minval=-bound, maxval=bound, dtype=jnp.float32
    )

    out = patch_merging_forward(x, proj_w)
    out = jax.block_until_ready(out)

    ref = patch_merging_reference(x, proj_w)
    assert out.shape == (B, 2 * dim, H // 2, W // 2), out.shape
    max_err = float(jnp.max(jnp.abs(out - ref)))
    # bf16 operands (f32 accumulation) -> loosened parity tolerance vs f32 ref.
    assert jnp.allclose(out, ref, atol=3e-2, rtol=3e-2), max_err

    print("KERNEL_OK")
</pallas_src>

<mosaic_0001>
module attributes {stable_mosaic.version = 11 : i64} {
  func.func @_merge_proj_kernel(%arg0: i32, %arg1: i32, %arg2: memref<1x256x256xbf16, #tpu.memory_space<vmem>>, %arg3: memref<128x256xbf16, #tpu.memory_space<vmem>>, %arg4: memref<1x128x256xf32, #tpu.memory_space<vmem>>) attributes {dimension_semantics = [#tpu.dimension_semantics<parallel>, #tpu.dimension_semantics<parallel>], iteration_bounds = array<i64: 2, 1>, scalar_prefetch = 0 : i64, scratch_operands = 0 : i64, tpu.core_type = #tpu.core_type<tc>, window_params = [{transform_indices = @transform_0, window_bounds = array<i64: 1, 256, 256>}, {pipeline_mode = #tpu.pipeline_mode<synchronous>, transform_indices = @transform_1, window_bounds = array<i64: 128, 256>}, {transform_indices = @transform_2, window_bounds = array<i64: 1, 128, 256>}]} {
    %c0 = arith.constant 0 : index
    %c0_0 = arith.constant 0 : index
    %0 = vector.load %arg3[%c0, %c0_0] : memref<128x256xbf16, #tpu.memory_space<vmem>>, vector<128x256xbf16>
    %c0_1 = arith.constant 0 : index
    %c0_2 = arith.constant 0 : index
    %c0_3 = arith.constant 0 : index
    %1 = vector.load %arg2[%c0_1, %c0_2, %c0_3] : memref<1x256x256xbf16, #tpu.memory_space<vmem>>, vector<1x256x256xbf16>
    %2 = vector.shape_cast %1 : vector<1x256x256xbf16> to vector<256x256xbf16>
    %cst = arith.constant dense<0.000000e+00> : vector<128x256xf32>
    %3 = tpu.matmul %0, %2, %cst {dimension_numbers = #tpu.dot_dimension_numbers<[1], [0], [0], [1], [0, 0, 1, 1], [], []>} : vector<128x256xbf16>, vector<256x256xbf16>, vector<128x256xf32> -> vector<128x256xf32>
    %c0_4 = arith.constant 0 : index
    %c0_5 = arith.constant 0 : index
    %c0_6 = arith.constant 0 : index
    %4 = vector.load %arg4[%c0_4, %c0_5, %c0_6] : memref<1x128x256xf32, #tpu.memory_space<vmem>>, vector<1x128x256xf32>
    %5 = vector.shape_cast %4 : vector<1x128x256xf32> to vector<128x256xf32>
    %6 = vector.shape_cast %3 : vector<128x256xf32> to vector<1x128x256xf32>
    tpu.vector_store %arg4[%c0_4, %c0_5, %c0_6], %6 {strides = array<i32>} : memref<1x128x256xf32, #tpu.memory_space<vmem>>, vector<1x128x256xf32>,
    return
  }
  func.func @transform_0(%arg0: i32, %arg1: i32) -> (i32, i32, i32) {
    %c0_i32 = arith.constant 0 : i32
    %c0_i32_0 = arith.constant 0 : i32
    return %arg0, %c0_i32, %arg1 : i32, i32, i32
  }
  func.func @transform_1(%arg0: i32, %arg1: i32) -> (i32, i32) {
    %c0_i32 = arith.constant 0 : i32
    %c0_i32_0 = arith.constant 0 : i32
    %c0_i32_1 = arith.constant 0 : i32
    return %c0_i32, %c0_i32_0 : i32, i32
  }
  func.func @transform_2(%arg0: i32, %arg1: i32) -> (i32, i32, i32) {
    %c0_i32 = arith.constant 0 : i32
    %c0_i32_0 = arith.constant 0 : i32
    return %arg0, %c0_i32, %arg1 : i32, i32, i32
  }
}

</mosaic_0001>

<bundles_post_ra>
// kernel: tpu_custom_call.1
= control target key start
LH: loop header
LB: loop body
LE: loop exit
PB: predicated region body
PF: predicated region fallthrough
CT: control target
= control target key end

     0   :  { %7 = vsyncpa [#allocation3], 0  ;;  %s1457_s0 = inlined_call_operand.hbm [shape: bf16[2,256,256], index: 0, kind: input, shape index: {}]   ;;  %s1458_s1 = inlined_call_operand.hbm [shape: bf16[128,256], index: 1, kind: input, shape index: {}]   ;;  %s1459_s2 = inlined_call_operand.hbm [shape: f32[2,128,256], index: 2, kind: output, shape index: {}]  }
   0x1   :  { %9 = vsyncpa [#allocation3 + $0x1], 0 }
   0x2   :  { %10 = vsyncpa [#allocation6], 0 }
   0x3   :  { %11 = vsyncpa [#allocation4], 0 }
   0x4   :  { %13 = vsyncpa [#allocation4 + $0x1], 0  ;;  %s1159_s9 = smov 0   ;;  %s1161_s10 = smov 0  }
   0x5   :  { %s1163_s11 = smov 0   ;;  %s1165_s12 = smov 0  }
   0x6   :  { %s1167_s13 = smov 0   ;;  %s1169_s14 = smov 0  }
   0x7 LB: > { %s743_s15 = sadd.s32 4294967295, %s1135_s14   ;;  %s744_s16 = sadd.s32 4294967294, %s1135_s14   ;;  %s1135_s14 = sphi %s1169_s14, %s19_s14   ;;  %s1131_s13 = sphi %s1167_s13, %s1483_s13   ;;  %s1127_s12 = sphi %s1165_s12, %s1482_s12   ;;  %s1123_s11 = sphi %s1163_s11, %s1481_s11   ;;  %s1119_s10 = sphi %s1161_s10, %s1480_s10   ;;  %s1115_s9 = sphi %s1159_s9, %s1479_s9  }
   0x8   : > { %p53_p0 = scmp.ne.s32.totalorder %s1119_s10, %s1115_s9  ;;  %p1193_p1 = scmp.eq.s32.totalorder %s743_s15, 0 }
   0x9   : > { %p1197_p2 = scmp.eq.s32.totalorder %s743_s15, 1  ;;  %p106_p3 = scmp.eq.s32.totalorder %s744_s16, 1 }
   0xa   : > { %s1464_s17 = scalar_select %p1193_p1, 1, 0 }
   0xb   : > { %s1465_s18 = scalar_select %p1197_p2, 1, 0 }
   0xc   : > { %p1203_p4 = por %p1193_p1, %p53_p0  ;;  %p745_p5 = scmp.ge.s32.totalorder %s1135_s14, 1 }
   0xd   : > { %p1208_p6 = por %p106_p3, %p53_p0  ;;  %p113_p7 = scmp.lt.s32.totalorder %s1135_s14, 3 }
   0xe   : > { %s1466_s19 = scalar_select %p1203_p4, 1, 0 }
   0xf   : > { %s1467_s20 = scalar_select %p1208_p6, 1, 0 }
  0x10   : > { %p1213_p8 = pnand %p745_p5, %p113_p7  ;;  %s1137_s22 = smov [#allocation5]  }
  0x11   : > { %s125_s23 = sshll.u32 %s1137_s22, 4  ;;  %s31_s25 = sadd.s32 1, %s1131_s13  ;;  %s126_s23 = int_to_ptr.vmem [resolvable:$true] %s125_s23 }
  0x12   : > { %s1468_s21 = scalar_select %p1213_p8, 1, 0 }
  0x13   : > { %p850_p9 = pneg %p1213_p8  ;;  %s991_s28 = scalar_lea.hbm %s1458_s1, 2048 }
  0x14   : > { %p992_p12 = scmp.ne.s32.totalorder %s1458_s1, %s991_s28  ;;  %p998_p5 = scmp.lt.u32.totalorder %s991_s28, %s1458_s1 }
  0x15   : > { %p1222_p11 = pnand %p850_p9, %p1193_p1 }
  0x17   : > { %p993_p13 = pneg %p1222_p11 }
  0x19   : > { %p994_p0 = pnand %p993_p13, %p992_p12 }
  0x1b   : > { %p995_p3 = pneg %p994_p0 }
  0x1d   : > { %p1000_p7 = pnand %p998_p5, %p995_p3 }
  0x1f   : > { %1003 = shalt.err (!%p1000_p7)
}
  0x20   : > { %s1004_s5 = scalar_lea.vmem %s126_s23, 2048  ;;  %p1012_p1 = scmp.lt.s32.totalorder %s126_s23, %s126_s23 }
  0x21   : > { %p1005_p9 = scmp.ne.s32.totalorder %s126_s23, %s1004_s5  ;;  %p1013_p4 = scmp.lt.s32.totalorder %s1004_s5, %s1004_s5 }
  0x23   : > { %p1007_p10 = pnand %p1005_p9, %p993_p13  ;;  %p1014_p8 = por %p1013_p4, %p1012_p1 }
  0x25   : > { %p1008_p6 = pneg %p1007_p10 }
  0x27   : > { %p1015_p2 = pnand %p1014_p8, %p1008_p6 }
  0x29   : > { %1018 = shalt.err (!%p1015_p2)
}
  0x2a   : > { %s1138_s6 = smov 128   ;;  %s1139_s7 = smov 8  }
  0x2b   : > { %853 = dma.hbm_to_vmem [thread:$0]  (!%p1222_p11), %s1458_s1, 2048, %s126_s23, [#allocation6], %s1138_s6, %s1138_s6, %s1139_s7  }
  0x2c   : > { %p33_p1 = scmp.ge.s32.totalorder %s31_s25, 2  ;;  %s40_s16 = sadd.s32 1, %s1123_s11 }
  0x2d   : > { %p47_p2 = scmp.ne.s32.totalorder %s1123_s11, %s1119_s10  ;;  %p48_p4 = scmp.eq.s32.totalorder %s1135_s14, 0 }
  0x2e   : > { %s1485_s25 = smov (%p33_p1, %s31_s25), 0  ;;  %p1471_p8 = scmp.ne.s32.totalorder %s1465_s18, 0 }
  0x2f   : > { %p1252_p6 = por %p48_p4, %p47_p2  ;;  %s35_s26 = ssub.s32 %s1131_s13, %s1485_s25 }
  0x30   : > { %p1258_p10 = por %p1471_p8, %p47_p2  ;;  %p863_p12 = scmp.lt.s32.totalorder %s1135_s14, 2 }
  0x31   : > { %p38_p11 = scmp.eq.s32.totalorder %s35_s26, 0  ;;  %s139_s23 = sand.u32 1, %s1123_s11  }
  0x32   : > { %s748_s27 = sshll.u32 %s139_s23, 8  ;;  %s808_s29 = sshll.u32 %s1131_s13, 12 }
  0x33   : > { %s1267_s28 = scalar_select %p38_p11, %s1123_s11, %s40_s16  }
  0x34   : > { %s1273_s4 = scalar_lea.hbm %s1457_s0, %s808_s29  ;;  %s143_s18 = scalar_lea.vmem [#allocation2], %s748_s27 }
  0x35   : > { %s152_s5 = sshll.u32 %s143_s18, 4  ;;  %p1279_p13 = pnand %p863_p12, %p1252_p6  ;;  %s1275_s5 = int_to_ptr.vmem [resolvable:$true] %s152_s5 }
  0x36   : > { %s1283_s15 = scalar_lea.sflag [#allocation3], %s139_s23  ;;  %s1019_s16 = scalar_lea.hbm %s1273_s4, 4096 }
  0x37   : > { %p1020_p0 = scmp.ne.s32.totalorder %s1273_s4, %s1019_s16  ;;  %p1021_p3 = pneg %p1279_p13 }
  0x38   : > { %s1024_s22 = scalar_lea.hbm %s1457_s0, 8192  ;;  %p1025_p9 = scmp.lt.u32.totalorder %s1273_s4, %s1457_s0 }
  0x39   : > { %p1022_p5 = pnand %p1021_p3, %p1020_p0  ;;  %p1026_p1 = scmp.lt.u32.totalorder %s1024_s22, %s1019_s16 }
  0x3a   : > { %p1028_p4 = scmp.lt.u32.totalorder %s1019_s16, %s1273_s4 }
  0x3b   : > { %p1023_p7 = pneg %p1022_p5  ;;  %p1027_p2 = por %p1026_p1, %p1025_p9 }
  0x3d   : > { %p1029_p6 = por %p1028_p4, %p1027_p2 }
  0x3f   : > { %p1030_p8 = pnand %p1029_p6, %p1023_p7 }
  0x41   : > { %1033 = shalt.err (!%p1030_p8)
}
  0x42   : > { %s1034_s23 = scalar_lea.vmem %s1275_s5, 4096  ;;  %s1140_s3 = smov [#allocation2]  }
  0x43   : > { %p1035_p12 = scmp.ne.s32.totalorder %s1275_s5, %s1034_s23  ;;  %s1039_s18 = sshll.u32 %s1140_s3, 4  ;;  %s1040_s18 = int_to_ptr.vmem [resolvable:$false] %s1039_s18 }
  0x44   : > { %s1041_s26 = scalar_lea.vmem %s1040_s18, 8192  ;;  %p1042_p5 = scmp.lt.s32.totalorder %s1275_s5, %s1040_s18 }
  0x45   : > { %p1037_p11 = pnand %p1035_p12, %p1021_p3  ;;  %p1043_p9 = scmp.lt.s32.totalorder %s1041_s26, %s1034_s23 }
  0x47   : > { %p1038_p0 = pneg %p1037_p11  ;;  %p1044_p1 = por %p1043_p9, %p1042_p5 }
  0x49   : > { %p1045_p2 = pnand %p1044_p1, %p1038_p0 }
  0x4b   : > { %1048 = shalt.err (!%p1045_p2)
}
  0x4c   : > { %857 = dma.hbm_to_vmem [thread:$0]  (!%p1279_p13), %s1273_s4, 4096, %s1275_s5, %s1283_s15, %s1138_s6, %s1138_s6, %s1139_s7  }
  0x4d   : > { %p1474_p3 = scmp.ne.s32.totalorder %s1468_s21, 0 }
  0x4e   : > { %s1317_s16 = sand.u32 (!%p1474_p3), 1, %s1119_s10   ;;  %p1475_p7 = scmp.ne.s32.totalorder (!%p1474_p3), %s1466_s19, 0 }
  0x4f   : > { %164 = sbr.rel (%p1474_p3) target bundleno = 409 (0x199), region = 28  ;;  %s752_s27 = sshll.u32 (!%p1474_p3), %s1317_s16, 8 }
  0x50   : > { %s167_s22 = scalar_lea.sflag (!%p1474_p3), [#allocation3], %s1317_s16  ;;  %s1323_s8 = scalar_lea.vmem (!%p1474_p3), [#allocation2], %s752_s27 }
  0x56   : > { %1102 = dma.done.wait (%p1475_p7), %s167_s22, 4096  }
  0x57   : > { %1104 = vsyncadd (%p1475_p7), %s167_s22, 4294963200  ;;  %p1476_p13 = scmp.ne.s32.totalorder %s1464_s17, 0 }
  0x59   : > { %1106 = dma.done.wait (%p1476_p13), [#allocation6], 2048  }
  0x5a   : > { %1108 = vsyncadd (%p1476_p13), [#allocation6], 4294965248  ;;  %v919_v0 = vld [vmem:[%s1323_s8 + $0x4] ss:$8 sps:$4 sm:$0xff]   ;;  %v921_v1 = vld [vmem:[%s1323_s8] ss:$8 sps:$4 sm:$0xff]  }
  0x5b   : > { %485 = vmatprep.subr.bf16.mxu0 %v919_v0  ;;  %810 = vmatprep.subr.bf16.mxu1 %v919_v0  ;;  %v922_v2 = vld [vmem:[%s1323_s8 + $0x14] ss:$8 sps:$4 sm:$0xff]   ;;  %v924_v3 = vld [vmem:[%s1323_s8 + $0x10] ss:$8 sps:$4 sm:$0xff]   ;;  %v925_v4 = vld [vmem:[%s1323_s8 + $0x24] ss:$8 sps:$4 sm:$0xff]  }
  0x5c   : > { %486 = vmatpush1.bf16.msra.mxu0 %v921_v1  ;;  %826 = vmatpush1.bf16.msra.mxu1 %v921_v1  ;;  %v927_v5 = vld [vmem:[%s1323_s8 + $0x20] ss:$8 sps:$4 sm:$0xff]   ;;  %v928_v6 = vld [vmem:[%s1323_s8 + $0x34] ss:$8 sps:$4 sm:$0xff]   ;;  %v930_v7 = vld [vmem:[%s1323_s8 + $0x30] ss:$8 sps:$4 sm:$0xff]  }
  0x5d   : > { %487 = vmatprep.subr.bf16.mxu0 %v922_v2  ;;  %811 = vmatprep.subr.bf16.mxu1 %v922_v2  ;;  %v931_v8 = vld [vmem:[%s1323_s8 + $0x44] ss:$8 sps:$4 sm:$0xff]   ;;  %v933_v9 = vld [vmem:[%s1323_s8 + $0x40] ss:$8 sps:$4 sm:$0xff]   ;;  %v934_v10 = vld [vmem:[%s1323_s8 + $0x54] ss:$8 sps:$4 sm:$0xff]  }
  0x5e   : > { %v936_v11 = vld [vmem:[%s1323_s8 + $0x50] ss:$8 sps:$4 sm:$0xff]   ;;  %v937_v12 = vld [vmem:[%s1323_s8 + $0x64] ss:$8 sps:$4 sm:$0xff]   ;;  %v939_v14 = vld [vmem:[%s1323_s8 + $0x60] ss:$8 sps:$4 sm:$0xff]  }
  0x5f   : > { %v969_v13 = vld [vmem:[#allocation5 + $0x4] ss:$8 sps:$4 sm:$0xff]   ;;  %v940_v16 = vld [vmem:[%s1323_s8 + $0x74] ss:$8 sps:$4 sm:$0xff]   ;;  %v942_v17 = vld [vmem:[%s1323_s8 + $0x70] ss:$8 sps:$4 sm:$0xff]  }
  0x60   : > { %488 = vmatpush1.bf16.msra.mxu0 %v924_v3  ;;  %827 = vmatpush1.bf16.msra.mxu1 %v924_v3  ;;  %v972_v15 = vld [vmem:[#allocation5 + $0x44] ss:$8 sps:$4 sm:$0xff]   ;;  %v945_v19 = vld [vmem:[%s1323_s8 + $0x80] ss:$8 sps:$4 sm:$0xff]   ;;  %v946_v20 = vld [vmem:[%s1323_s8 + $0x94] ss:$8 sps:$4 sm:$0xff]  }
  0x61   : > { %489 = vmatprep.subr.bf16.mxu0 %v925_v4  ;;  %812 = vmatprep.subr.bf16.mxu1 %v925_v4  ;;  %v943_v18 = vld [vmem:[%s1323_s8 + $0x84] ss:$8 sps:$4 sm:$0xff]   ;;  %v948_v21 = vld [vmem:[%s1323_s8 + $0x90] ss:$8 sps:$4 sm:$0xff]   ;;  %v951_v23 = vld [vmem:[%s1323_s8 + $0xa0] ss:$8 sps:$4 sm:$0xff]  }
  0x62   : > { %517 = vmatprep.mubr.bf16.mxu0 %v969_v13  ;;  %557 = vmatprep.mubr.bf16.mxu1 %v972_v15  ;;  %v949_v22 = vld [vmem:[%s1323_s8 + $0xa4] ss:$8 sps:$4 sm:$0xff]   ;;  %v952_v24 = vld [vmem:[%s1323_s8 + $0xb4] ss:$8 sps:$4 sm:$0xff]   ;;  %v954_v25 = vld [vmem:[%s1323_s8 + $0xb0] ss:$8 sps:$4 sm:$0xff]  }
  0x63   : > { %v955_v26 = vld [vmem:[%s1323_s8 + $0xc4] ss:$8 sps:$4 sm:$0xff]   ;;  %v957_v27 = vld [vmem:[%s1323_s8 + $0xc0] ss:$8 sps:$4 sm:$0xff]   ;;  %v958_v28 = vld [vmem:[%s1323_s8 + $0xd4] ss:$8 sps:$4 sm:$0xff]  }
  0x64   : > { %490 = vmatpush1.bf16.msra.mxu0 %v927_v5  ;;  %828 = vmatpush1.bf16.msra.mxu1 %v927_v5  ;;  %v960_v29 = vld [vmem:[%s1323_s8 + $0xd0] ss:$8 sps:$4 sm:$0xff]   ;;  %v961_v30 = vld [vmem:[%s1323_s8 + $0xe4] ss:$8 sps:$4 sm:$0xff]   ;;  %v963_v31 = vld [vmem:[%s1323_s8 + $0xe0] ss:$8 sps:$4 sm:$0xff]  }
  0x65   : > { %491 = vmatprep.subr.bf16.mxu0 %v928_v6  ;;  %813 = vmatprep.subr.bf16.mxu1 %v928_v6  ;;  %v964_v32 = vld [vmem:[%s1323_s8 + $0xf4] ss:$8 sps:$4 sm:$0xff]   ;;  %v966_v33 = vld [vmem:[%s1323_s8 + $0xf0] ss:$8 sps:$4 sm:$0xff]   ;;  %v967_v34 = vld [vmem:[#allocation5] ss:$8 sps:$4 sm:$0xff]  }
  0x66   : > { %v970_v35 = vld [vmem:[#allocation5 + $0x40] ss:$8 sps:$4 sm:$0xff]   ;;  %v973_v36 = vld [vmem:[#allocation5 + $0x14] ss:$8 sps:$4 sm:$0xff]   ;;  %v977_v38 = vld [vmem:[#allocation5 + $0x10] ss:$8 sps:$4 sm:$0xff]  }
  0x67   : > { %v975_v37 = vld [vmem:[#allocation5 + $0x54] ss:$8 sps:$4 sm:$0xff]   ;;  %v978_v39 = vld [vmem:[#allocation5 + $0x50] ss:$8 sps:$4 sm:$0xff]   ;;  %v979_v40 = vld [vmem:[#allocation5 + $0x24] ss:$8 sps:$4 sm:$0xff]  }
  0x68   : > { %492 = vmatpush1.bf16.msra.mxu0 %v930_v7  ;;  %829 = vmatpush1.bf16.msra.mxu1 %v930_v7  ;;  %v981_v41 = vld [vmem:[#allocation5 + $0x64] ss:$8 sps:$4 sm:$0xff]   ;;  %v983_v42 = vld [vmem:[#allocation5 + $0x20] ss:$8 sps:$4 sm:$0xff]   ;;  %v985_v44 = vld [vmem:[#allocation5 + $0x34] ss:$8 sps:$4 sm:$0xff]  }
  0x69   : > { %493 = vmatprep.subr.bf16.mxu0 %v931_v8  ;;  %814 = vmatprep.subr.bf16.mxu1 %v931_v8  ;;  %v984_v43 = vld [vmem:[#allocation5 + $0x60] ss:$8 sps:$4 sm:$0xff]   ;;  %v987_v45 = vld [vmem:[#allocation5 + $0x74] ss:$8 sps:$4 sm:$0xff]   ;;  %v989_v46 = vld [vmem:[#allocation5 + $0x30] ss:$8 sps:$4 sm:$0xff]  }
  0x6a   : > { %v990_v47 = vld [vmem:[#allocation5 + $0x70] ss:$8 sps:$4 sm:$0xff]   ;;  %s1367_s17 = scalar_lea.vmem [#allocation7], %s752_s27  ;;  %s809_s19 = sshll.u32 %s1127_s12, 12 }
  0x6b   : > { %s646_s21 = sshll.u32 %s1367_s17, 4  ;;  %s1400_s4 = scalar_lea.hbm %s1459_s2, %s809_s19  ;;  %s1402_s21 = int_to_ptr.vmem [resolvable:$true] %s646_s21 }
  0x6c   : > { %494 = vmatpush1.bf16.msra.mxu0 %v933_v9  ;;  %830 = vmatpush1.bf16.msra.mxu1 %v933_v9  ;;  %s631_s12 = scalar_lea.sflag [#allocation4], %s1317_s16  ;;  %s1049_s5 = scalar_lea.vmem %s1402_s21, 4096 }
  0x6d   : > { %495 = vmatprep.subr.bf16.mxu0 %v934_v10  ;;  %815 = vmatprep.subr.bf16.mxu1 %v934_v10  ;;  %p1050_p4 = scmp.ne.s32.totalorder %s1402_s21, %s1049_s5  ;;  %s1141_s15 = smov [#allocation7]  }
  0x6e   : > { %s1053_s29 = sshll.u32 %s1141_s15, 4  ;;  %s1054_s29 = int_to_ptr.vmem [resolvable:$false] %s1053_s29 }
  0x6f   : > { %p1051_p6 = pnand %p1050_p4, %p1258_p10  ;;  %s1055_s30 = scalar_lea.vmem %s1054_s29, 8192 }
  0x70   : > { %496 = vmatpush1.bf16.msra.mxu0 %v936_v11  ;;  %831 = vmatpush1.bf16.msra.mxu1 %v936_v11  ;;  %p1056_p12 = scmp.lt.s32.totalorder %s1402_s21, %s1054_s29  ;;  %p1057_p11 = scmp.lt.s32.totalorder %s1055_s30, %s1049_s5 }
  0x71   : > { %497 = vmatprep.subr.bf16.mxu0 %v937_v12  ;;  %816 = vmatprep.subr.bf16.mxu1 %v937_v12  ;;  %p1052_p8 = pneg %p1051_p6 }
  0x72   : > { %p1058_p0 = por %p1057_p11, %p1056_p12 }
  0x74   : > { %498 = vmatpush1.bf16.msra.mxu0 %v939_v14  ;;  %832 = vmatpush1.bf16.msra.mxu1 %v939_v14  ;;  %p1059_p5 = pnand %p1058_p0, %p1052_p8 }
  0x75   : > { %499 = vmatprep.subr.bf16.mxu0 %v940_v16  ;;  %817 = vmatprep.subr.bf16.mxu1 %v940_v16 }
  0x78   : > { %500 = vmatpush1.bf16.msra.mxu0 %v942_v17  ;;  %833 = vmatpush1.bf16.msra.mxu1 %v942_v17 }
  0x79   : > { %501 = vmatprep.subr.bf16.mxu0 %v943_v18  ;;  %818 = vmatprep.subr.bf16.mxu1 %v943_v18 }
  0x7c   : > { %502 = vmatpush1.bf16.msra.mxu0 %v945_v19  ;;  %834 = vmatpush1.bf16.msra.mxu1 %v945_v19 }
  0x7d   : > { %503 = vmatprep.subr.bf16.mxu0 %v946_v20  ;;  %819 = vmatprep.subr.bf16.mxu1 %v946_v20 }
  0x80   : > { %504 = vmatpush1.bf16.msra.mxu0 %v948_v21  ;;  %835 = vmatpush1.bf16.msra.mxu1 %v948_v21 }
  0x81   : > { %505 = vmatprep.subr.bf16.mxu0 %v949_v22  ;;  %820 = vmatprep.subr.bf16.mxu1 %v949_v22 }
  0x84   : > { %506 = vmatpush1.bf16.msra.mxu0 %v951_v23  ;;  %836 = vmatpush1.bf16.msra.mxu1 %v951_v23 }
  0x85   : > { %507 = vmatprep.subr.bf16.mxu0 %v952_v24  ;;  %821 = vmatprep.subr.bf16.mxu1 %v952_v24 }
  0x88   : > { %508 = vmatpush1.bf16.msra.mxu0 %v954_v25  ;;  %837 = vmatpush1.bf16.msra.mxu1 %v954_v25 }
  0x89   : > { %509 = vmatprep.subr.bf16.mxu0 %v955_v26  ;;  %822 = vmatprep.subr.bf16.mxu1 %v955_v26 }
  0x8c   : > { %510 = vmatpush1.bf16.msra.mxu0 %v957_v27  ;;  %838 = vmatpush1.bf16.msra.mxu1 %v957_v27 }
  0x8d   : > { %511 = vmatprep.subr.bf16.mxu0 %v958_v28  ;;  %823 = vmatprep.subr.bf16.mxu1 %v958_v28 }
  0x90   : > { %512 = vmatpush1.bf16.msra.mxu0 %v960_v29  ;;  %839 = vmatpush1.bf16.msra.mxu1 %v960_v29 }
  0x91   : > { %513 = vmatprep.subr.bf16.mxu0 %v961_v30  ;;  %824 = vmatprep.subr.bf16.mxu1 %v961_v30 }
  0x94   : > { %514 = vmatpush1.bf16.msra.mxu0 %v963_v31  ;;  %840 = vmatpush1.bf16.msra.mxu1 %v963_v31 }
  0x95   : > { %515 = vmatprep.subr.bf16.mxu0 %v964_v32  ;;  %825 = vmatprep.subr.bf16.mxu1 %v964_v32 }
  0x98   : > { %516 = vmatpush1.bf16.msra.mxu0 %v966_v33  ;;  %841 = vmatpush1.bf16.msra.mxu1 %v966_v33 }
  0x9b   : > { %518 = vmatmul.mubr.bf16.vlgmr.msra.gmra.mrb[0].mxu0 %v967_v34  ;;  %558 = vmatmul.mubr.bf16.vlgmr.msra.gmra.mrb[0].mxu1 %v970_v35 }
  0x9c   : > { %527 = vmatprep.mubr.bf16.mxu0 %v973_v36  ;;  %567 = vmatprep.mubr.bf16.mxu1 %v975_v37 }
  0xa3   : > { %528 = vmatmul.mubr.bf16.gmra.mrb[4].mxu0 %v977_v38  ;;  %568 = vmatmul.mubr.bf16.gmra.mrb[4].mxu1 %v978_v39 }
  0xa4   : > { %537 = vmatprep.mubr.bf16.mxu0 %v979_v40  ;;  %577 = vmatprep.mubr.bf16.mxu1 %v981_v41 }
  0xab   : > { %538 = vmatmul.mubr.bf16.gmra.mrb[8].mxu0 %v983_v42  ;;  %578 = vmatmul.mubr.bf16.gmra.mrb[8].mxu1 %v984_v43 }
  0xac   : > { %547 = vmatprep.mubr.bf16.mxu0 %v985_v44  ;;  %587 = vmatprep.mubr.bf16.mxu1 %v987_v45 }
  0xb3   : > { %548 = vmatmul.mubr.bf16.gmra.mrb[12].mxu0 %v989_v46  ;;  %588 = vmatmul.mubr.bf16.gmra.mrb[12].mxu1 %v990_v47 }
 0x16e   : > { %v519_v48 = vpop.f32.mrb[0].mxu0  ;;  %v559_v49 = vpop.f32.mrb[0].mxu1 }
 0x16f   : > { %598 = vst [vmem:[%s1367_s17] sm:$0xff] %v519_v48  ;;  %614 = vst [vmem:[%s1367_s17 + $0x80] sm:$0xff] %v559_v49  ;;  %v521_v50 = vpop.f32.mrb[1].mxu0  ;;  %v561_v51 = vpop.f32.mrb[1].mxu1 }
 0x170   : > { %599 = vst [vmem:[%s1367_s17 + $0x8] sm:$0xff] %v521_v50  ;;  %615 = vst [vmem:[%s1367_s17 + $0x88] sm:$0xff] %v561_v51  ;;  %v523_v52 = vpop.f32.mrb[2].mxu0  ;;  %v563_v53 = vpop.f32.mrb[2].mxu1 }
 0x171   : > { %600 = vst [vmem:[%s1367_s17 + $0x10] sm:$0xff] %v523_v52  ;;  %616 = vst [vmem:[%s1367_s17 + $0x90] sm:$0xff] %v563_v53  ;;  %v525_v54 = vpop.f32.mrb[3].mxu0  ;;  %v565_v55 = vpop.f32.mrb[3].mxu1 }
 0x172   : > { %601 = vst [vmem:[%s1367_s17 + $0x18] sm:$0xff] %v525_v54  ;;  %617 = vst [vmem:[%s1367_s17 + $0x98] sm:$0xff] %v565_v55 }
 0x176   : > { %v529_v56 = vpop.f32.mrb[4].mxu0  ;;  %v569_v57 = vpop.f32.mrb[4].mxu1 }
 0x177   : > { %602 = vst [vmem:[%s1367_s17 + $0x20] sm:$0xff] %v529_v56  ;;  %618 = vst [vmem:[%s1367_s17 + $0xa0] sm:$0xff] %v569_v57  ;;  %v531_v58 = vpop.f32.mrb[5].mxu0  ;;  %v571_v59 = vpop.f32.mrb[5].mxu1 }
 0x178   : > { %603 = vst [vmem:[%s1367_s17 + $0x28] sm:$0xff] %v531_v58  ;;  %619 = vst [vmem:[%s1367_s17 + $0xa8] sm:$0xff] %v571_v59  ;;  %v533_v60 = vpop.f32.mrb[6].mxu0  ;;  %v573_v61 = vpop.f32.mrb[6].mxu1 }
 0x179   : > { %604 = vst [vmem:[%s1367_s17 + $0x30] sm:$0xff] %v533_v60  ;;  %620 = vst [vmem:[%s1367_s17 + $0xb0] sm:$0xff] %v573_v61  ;;  %v535_v62 = vpop.f32.mrb[7].mxu0  ;;  %v575_v63 = vpop.f32.mrb[7].mxu1 }
 0x17a   : > { %605 = vst [vmem:[%s1367_s17 + $0x38] sm:$0xff] %v535_v62  ;;  %621 = vst [vmem:[%s1367_s17 + $0xb8] sm:$0xff] %v575_v63 }
 0x17e   : > { %v539_v0 = vpop.f32.mrb[8].mxu0  ;;  %v579_v1 = vpop.f32.mrb[8].mxu1 }
 0x17f   : > { %606 = vst [vmem:[%s1367_s17 + $0x40] sm:$0xff] %v539_v0  ;;  %622 = vst [vmem:[%s1367_s17 + $0xc0] sm:$0xff] %v579_v1  ;;  %v541_v2 = vpop.f32.mrb[9].mxu0  ;;  %v581_v3 = vpop.f32.mrb[9].mxu1 }
 0x180   : > { %607 = vst [vmem:[%s1367_s17 + $0x48] sm:$0xff] %v541_v2  ;;  %623 = vst [vmem:[%s1367_s17 + $0xc8] sm:$0xff] %v581_v3  ;;  %v543_v4 = vpop.f32.mrb[10].mxu0  ;;  %v583_v5 = vpop.f32.mrb[10].mxu1 }
 0x181   : > { %608 = vst [vmem:[%s1367_s17 + $0x50] sm:$0xff] %v543_v4  ;;  %624 = vst [vmem:[%s1367_s17 + $0xd0] sm:$0xff] %v583_v5  ;;  %v545_v6 = vpop.f32.mrb[11].mxu0  ;;  %v585_v7 = vpop.f32.mrb[11].mxu1 }
 0x182   : > { %609 = vst [vmem:[%s1367_s17 + $0x58] sm:$0xff] %v545_v6  ;;  %625 = vst [vmem:[%s1367_s17 + $0xd8] sm:$0xff] %v585_v7 }
 0x186   : > { %v549_v8 = vpop.f32.mrb[12].mxu0  ;;  %v589_v9 = vpop.f32.mrb[12].mxu1 }
 0x187   : > { %610 = vst [vmem:[%s1367_s17 + $0x60] sm:$0xff] %v549_v8  ;;  %626 = vst [vmem:[%s1367_s17 + $0xe0] sm:$0xff] %v589_v9  ;;  %v551_v10 = vpop.f32.mrb[13].mxu0  ;;  %v591_v11 = vpop.f32.mrb[13].mxu1 }
 0x188   : > { %611 = vst [vmem:[%s1367_s17 + $0x68] sm:$0xff] %v551_v10  ;;  %627 = vst [vmem:[%s1367_s17 + $0xe8] sm:$0xff] %v591_v11  ;;  %v553_v12 = vpop.f32.mrb[14].mxu0  ;;  %v593_v13 = vpop.f32.mrb[14].mxu1 }
 0x189   : > { %612 = vst [vmem:[%s1367_s17 + $0x70] sm:$0xff] %v553_v12  ;;  %628 = vst [vmem:[%s1367_s17 + $0xf0] sm:$0xff] %v593_v13  ;;  %v555_v14 = vpop.f32.mrb[15].mxu0  ;;  %v595_v15 = vpop.f32.mrb[15].mxu1 }
 0x18a   : > { %613 = vst [vmem:[%s1367_s17 + $0x78] sm:$0xff] %v555_v14  ;;  %629 = vst [vmem:[%s1367_s17 + $0xf8] sm:$0xff] %v595_v15 }
 0x18b   : > { %1062 = shalt.err (!%p1059_p5)
}
 0x18c   : > { %s1063_s23 = scalar_lea.hbm %s1400_s4, 4096  ;;  %s1067_s26 = scalar_lea.hbm %s1459_s2, 8192 }
 0x18d   : > { %p1064_p9 = scmp.ne.s32.totalorder %s1400_s4, %s1063_s23  ;;  %p1068_p3 = scmp.lt.u32.totalorder %s1400_s4, %s1459_s2 }
 0x18e   : > { %p1069_p7 = scmp.lt.u32.totalorder %s1067_s26, %s1063_s23  ;;  %p1071_p4 = scmp.lt.u32.totalorder %s1063_s23, %s1400_s4 }
 0x18f   : > { %p1065_p1 = pnand %p1064_p9, %p1258_p10 }
 0x190   : > { %p1070_p13 = por %p1069_p7, %p1068_p3 }
 0x191   : > { %p1066_p2 = pneg %p1065_p1 }
 0x192   : > { %p1072_p6 = por %p1071_p4, %p1070_p13 }
 0x194   : > { %p1073_p8 = pnand %p1072_p6, %p1066_p2 }
 0x196   : > { %1076 = shalt.err (!%p1073_p8)
}
 0x197   : > { %s1142_s8 = smov 256   ;;  %s1143_s17 = smov 16  }
 0x198   : > { %848 = dma.vmem_to_hbm [thread:$0]  (%p1258_p10), %s1402_s21, 4096, %s1400_s4, %s631_s12, %s1142_s8, %s1142_s8, %s1143_s17  }
 0x199 PF: > { %s661_s19 = sand.u32 1, %s1115_s9   ;;  %p1477_p12 = scmp.ne.s32.totalorder %s1467_s20, 0 }
 0x19a   : > { %p1478_p11 = scmp.ge.s32.totalorder %s1135_s14, 2  ;;  %s662_s6 = scalar_lea.sflag [#allocation4], %s661_s19 }
 0x19c   : > { %p859_p0 = pnand %p1478_p11, %p1477_p12 }
 0x19e   : > { %1110 = dma.done.wait (!%p859_p0), %s662_s6, 4096  }
 0x19f   : > { %1112 = vsyncadd (!%p859_p0), %s662_s6, 4294963200  ;;  %s19_s14 = sadd.s32 1, %s1135_s14   ;;  %s1479_s9 = smov %s1119_s10 }
 0x1a0   : > { %p16_p5 = scmp.ge.s32.totalorder %s19_s14, 4   ;;  %s1480_s10 = smov %s1123_s11 }
 0x1a1   : > { %s1481_s11 = smov %s1267_s28  ;;  %s1482_s12 = smov %s1131_s13 }
 0x1a2   : > { %s1483_s13 = smov %s1485_s25  ;;  %18 = sbr.rel (!%p16_p5) target bundleno = 7 (0x7), region = 77 }
 0x1a9   :  { %667 = vsyncpa [#allocation3], 1 }
 0x1aa   :  { %669 = vsyncpa [#allocation3 + $0x1], 1 }
 0x1ab   :  { %670 = vsyncpa [#allocation6], 1 }
 0x1ac   :  { %671 = vsyncpa [#allocation4], 1 }
 0x1ad   :  { %673 = vsyncpa [#allocation4 + $0x1], 1 }

</bundles_post_ra>
